<compile_context>
chip_gen: v7x
topology: tpu7x:2x2x1
jax: 0.10.0
libtpu: 0.0.40
codegen_flags: <defaults>
</compile_context>

<pallas_src>
import jax
import jax.numpy as jnp
from jax.experimental import pallas as pl
from jax.experimental.pallas import tpu as pltpu


def _round_up(n, m):
    return (n + m - 1) // m * m


def _pick_batch_block(B, bytes_per_batch, target_bytes=4 << 20, max_bb=16):
    """Largest divisor of B such that the input tile stays under `target_bytes`,
    the in-kernel unroll stays small, and (for megacore / v7x) the grid keeps at
    least 2 steps whenever B >= 2."""
    best = 1
    for d in range(1, min(B, max_bb) + 1):
        if B % d:
            continue
        if d * bytes_per_batch > target_bytes:
            continue
        if B >= 2 and B // d < 2:
            continue
        best = d
    return best


def _make_freq_attn_kernel(bb, inv_hw):
    def kernel(x_ref, pos_ref, w1_ref, w2_ref, o_ref):
        # x_ref: (bb, C, HWp)   padded lanes beyond the true H*W are zero
        # pos_ref: (C, 1); w1_ref: (Cr, C); w2_ref: (C, Cr); o_ref: (bb, C, HWp)

        # --- squeeze: global average pool per batch element -------------------
        # Padding lanes are zero, so sum / true_HW is the exact mean.
        cols = [
            jnp.sum(x_ref[b], axis=-1, keepdims=True) * inv_hw  # (C, 1)
            for b in range(bb)
        ]
        y = cols[0] if bb == 1 else jnp.concatenate(cols, axis=1)  # (C, bb)
        y = y + pos_ref[...]                                        # + position

        # --- SE bottleneck, batched over the bb columns (single MXU pass) -----
        h = jnp.dot(w1_ref[...], y, preferred_element_type=jnp.float32)  # (Cr, bb)
        h = jnp.maximum(h, 0.0)
        s = jnp.dot(w2_ref[...], h, preferred_element_type=jnp.float32)  # (C, bb)
        s = jax.nn.sigmoid(s)

        # --- excite: broadcast each batch's (C, 1) scale over spatial lanes ---
        # Index x_ref directly (no large live value) so loads stream from VMEM.
        for b in range(bb):
            o_ref[b] = (x_ref[b] * s[:, b:b + 1]).astype(o_ref.dtype)

    return kernel


def frequency_attention(x_nchw, position, w1, w2):
    """x_nchw: (B, C, H, W); position: (C, 1); w1: (Cr, C); w2: (C, Cr)."""
    B, C, H, W = x_nchw.shape
    HW = H * W
    Cr = w1.shape[0]
    dtype = x_nchw.dtype
    itemsize = jnp.dtype(dtype).itemsize

    # Flatten spatial to the lane axis and pad to a multiple of 128 so DMAs and
    # stores stay lane-dense (plain vst, no vst.msk). The mean divides by the
    # true HW, so zero padding does not change the result.
    HWp = _round_up(HW, 128)
    x_flat = x_nchw.reshape(B, C, HW)
    if HWp != HW:
        x_flat = jnp.pad(x_flat, ((0, 0), (0, 0), (0, HWp - HW)))

    # Batch-block size: the kernel is HBM-bandwidth bound, so amortize the
    # ~0.35us per-grid-step overhead by moving a few MB of x per step, while
    # keeping >= 2 grid steps so the batch axis can shard across both v7x cores.
    bytes_per_batch = C * HWp * itemsize
    bb = _pick_batch_block(B, bytes_per_batch)

    # VMEM budget: double-buffered input + output tiles plus (tiny) weights,
    # clamped well inside v7x's 64 MiB physical VMEM.
    tile_bytes = bb * C * HWp * itemsize
    vmem_limit_bytes = int(min(48 << 20, max(32 << 20, 4 * tile_bytes + (8 << 20))))

    # NOTE: for feature maps so large that a double-buffered (C, HWp) slab would
    # not fit VMEM (mostly a v7x concern), a two-pass variant (compute the
    # (B, C, 1) scale first, then tile the excite over HW) would be preferable.

    kernel = _make_freq_attn_kernel(bb, 1.0 / float(HW))

    out = pl.pallas_call(
        kernel,
        out_shape=jax.ShapeDtypeStruct((B, C, HWp), dtype),
        grid_spec=pltpu.PrefetchScalarGridSpec(
            num_scalar_prefetch=0,
            grid=(B // bb,),
            in_specs=[
                pl.BlockSpec((bb, C, HWp), lambda i: (i, 0, 0)),
                pl.BlockSpec((C, 1), lambda i: (0, 0)),
                pl.BlockSpec((Cr, C), lambda i: (0, 0)),
                pl.BlockSpec((C, Cr), lambda i: (0, 0)),
            ],
            out_specs=pl.BlockSpec((bb, C, HWp), lambda i: (i, 0, 0)),
        ),
        compiler_params=pltpu.CompilerParams(
            dimension_semantics=("parallel",),
            vmem_limit_bytes=vmem_limit_bytes,
        ),
    )(x_flat, position.astype(jnp.float32), w1.astype(jnp.float32),
      w2.astype(jnp.float32))

    if HWp != HW:
        out = out[:, :, :HW]
    return out.reshape(B, C, H, W)


def frequency_attention_ref(x, position, w1, w2):
    """Pure-JAX reference matching the PyTorch forward."""
    y = jnp.mean(x, axis=(2, 3), keepdims=True)                 # avgpool -> (B,C,1,1)
    y = y + position.reshape(1, -1, 1, 1)                       # + position
    y = jnp.einsum("oc,bcij->boij", w1, y)                      # fc1 (1x1 conv)
    y = jnp.maximum(y, 0.0)                                     # relu
    y = jnp.einsum("oc,bcij->boij", w2, y)                      # fc2 (1x1 conv)
    y = jax.nn.sigmoid(y)                                       # sigmoid
    return x * y


if __name__ == "__main__":
    # Small shapes consistent with the module (in_channels == out_channels, ratio=1).
    B, C, H, W = 2, 4, 16, 16
    ratio = 1
    Cr = C // ratio

    key = jax.random.PRNGKey(0)
    kx, kp, kw1, kw2 = jax.random.split(key, 4)

    x = jax.random.normal(kx, (B, C, H, W), dtype=jnp.float32)
    # nn.Parameter(torch.randn(1, out_channels, 1, 1) * 0.3) -> stored as (C, 1)
    position = jax.random.normal(kp, (C, 1), dtype=jnp.float32) * 0.3
    # Conv2d 1x1 weights, no bias: (out, in)
    w1 = jax.random.normal(kw1, (Cr, C), dtype=jnp.float32) * 0.1
    w2 = jax.random.normal(kw2, (C, Cr), dtype=jnp.float32) * 0.1

    out = frequency_attention(x, position, w1, w2)
    out = jax.block_until_ready(out)

    ref = frequency_attention_ref(x, position, w1, w2)
    assert out.shape == (B, C, H, W)
    assert jnp.allclose(out, ref, atol=1e-5, rtol=1e-5), "mismatch vs reference"

    print("KERNEL_OK")
</pallas_src>

<mosaic_0001>
module attributes {stable_mosaic.version = 11 : i64} {
  func.func @kernel(%arg0: i32, %arg1: memref<1x4x256xf32, #tpu.memory_space<vmem>>, %arg2: memref<4x1xf32, #tpu.memory_space<vmem>>, %arg3: memref<4x4xf32, #tpu.memory_space<vmem>>, %arg4: memref<4x4xf32, #tpu.memory_space<vmem>>, %arg5: memref<1x4x256xf32, #tpu.memory_space<vmem>>) attributes {dimension_semantics = [#tpu.dimension_semantics<parallel>], iteration_bounds = array<i64: 2>, scalar_prefetch = 0 : i64, scratch_operands = 0 : i64, tpu.core_type = #tpu.core_type<tc>, window_params = [{transform_indices = @transform_0, window_bounds = array<i64: 1, 4, 256>}, {pipeline_mode = #tpu.pipeline_mode<synchronous>, transform_indices = @transform_1, window_bounds = array<i64: 4, 1>}, {pipeline_mode = #tpu.pipeline_mode<synchronous>, transform_indices = @transform_2, window_bounds = array<i64: 4, 4>}, {pipeline_mode = #tpu.pipeline_mode<synchronous>, transform_indices = @transform_3, window_bounds = array<i64: 4, 4>}, {transform_indices = @transform_4, window_bounds = array<i64: 1, 4, 256>}]} {
    %c0 = arith.constant 0 : index
    %c0_0 = arith.constant 0 : index
    %c0_1 = arith.constant 0 : index
    %0 = vector.load %arg1[%c0, %c0_0, %c0_1] : memref<1x4x256xf32, #tpu.memory_space<vmem>>, vector<1x4x256xf32>
    %1 = vector.shape_cast %0 : vector<1x4x256xf32> to vector<4x256xf32>
    %cst = arith.constant dense<0.000000e+00> : vector<4xf32>
    %2 = vector.multi_reduction <add>, %1, %cst [1] : vector<4x256xf32> to vector<4xf32>
    %3 = vector.shape_cast %2 : vector<4xf32> to vector<4x1xf32>
    %cst_2 = arith.constant 3.906250e-03 : f32
    %4 = vector.broadcast %cst_2 : f32 to vector<4x1xf32>
    %5 = arith.mulf %3, %4 : vector<4x1xf32>
    %c0_3 = arith.constant 0 : index
    %c0_4 = arith.constant 0 : index
    %6 = vector.load %arg2[%c0_3, %c0_4] : memref<4x1xf32, #tpu.memory_space<vmem>>, vector<4x1xf32>
    %7 = arith.addf %5, %6 : vector<4x1xf32>
    %c0_5 = arith.constant 0 : index
    %c0_6 = arith.constant 0 : index
    %8 = vector.load %arg3[%c0_5, %c0_6] : memref<4x4xf32, #tpu.memory_space<vmem>>, vector<4x4xf32>
    %cst_7 = arith.constant dense<0.000000e+00> : vector<4x1xf32>
    %9 = tpu.matmul %8, %7, %cst_7 {dimension_numbers = #tpu.dot_dimension_numbers<[1], [0], [0], [1], [0, 0, 1, 1], [], []>} : vector<4x4xf32>, vector<4x1xf32>, vector<4x1xf32> -> vector<4x1xf32>
    %cst_8 = arith.constant 0.000000e+00 : f32
    %10 = vector.broadcast %cst_8 : f32 to vector<4x1xf32>
    %11 = arith.maximumf %9, %10 : vector<4x1xf32>
    %c0_9 = arith.constant 0 : index
    %c0_10 = arith.constant 0 : index
    %12 = vector.load %arg4[%c0_9, %c0_10] : memref<4x4xf32, #tpu.memory_space<vmem>>, vector<4x4xf32>
    %cst_11 = arith.constant dense<0.000000e+00> : vector<4x1xf32>
    %13 = tpu.matmul %12, %11, %cst_11 {dimension_numbers = #tpu.dot_dimension_numbers<[1], [0], [0], [1], [0, 0, 1, 1], [], []>} : vector<4x4xf32>, vector<4x1xf32>, vector<4x1xf32> -> vector<4x1xf32>
    %14 = arith.negf %13 : vector<4x1xf32>
    %15 = math.exp %14 : vector<4x1xf32>
    %cst_12 = arith.constant 1.000000e+00 : f32
    %16 = vector.broadcast %cst_12 : f32 to vector<4x1xf32>
    %17 = arith.addf %16, %15 : vector<4x1xf32>
    %18 = arith.divf %16, %17 : vector<4x1xf32>
    %c0_13 = arith.constant 0 : index
    %c0_14 = arith.constant 0 : index
    %c0_15 = arith.constant 0 : index
    %19 = vector.load %arg1[%c0_13, %c0_14, %c0_15] : memref<1x4x256xf32, #tpu.memory_space<vmem>>, vector<1x4x256xf32>
    %20 = vector.shape_cast %19 : vector<1x4x256xf32> to vector<4x256xf32>
    %21 = vector.broadcast %18 : vector<4x1xf32> to vector<4x256xf32>
    %22 = arith.mulf %20, %21 : vector<4x256xf32>
    %c0_16 = arith.constant 0 : index
    %c0_17 = arith.constant 0 : index
    %c0_18 = arith.constant 0 : index
    %23 = vector.load %arg5[%c0_16, %c0_17, %c0_18] : memref<1x4x256xf32, #tpu.memory_space<vmem>>, vector<1x4x256xf32>
    %24 = vector.shape_cast %23 : vector<1x4x256xf32> to vector<4x256xf32>
    %25 = vector.shape_cast %22 : vector<4x256xf32> to vector<1x4x256xf32>
    tpu.vector_store %arg5[%c0_16, %c0_17, %c0_18], %25 {strides = array<i32>} : memref<1x4x256xf32, #tpu.memory_space<vmem>>, vector<1x4x256xf32>,
    return
  }
  func.func @transform_0(%arg0: i32) -> (i32, i32, i32) {
    %c0_i32 = arith.constant 0 : i32
    %c0_i32_0 = arith.constant 0 : i32
    %c0_i32_1 = arith.constant 0 : i32
    return %arg0, %c0_i32, %c0_i32_0 : i32, i32, i32
  }
  func.func @transform_1(%arg0: i32) -> (i32, i32) {
    %c0_i32 = arith.constant 0 : i32
    %c0_i32_0 = arith.constant 0 : i32
    %c0_i32_1 = arith.constant 0 : i32
    return %c0_i32, %c0_i32_0 : i32, i32
  }
  func.func @transform_2(%arg0: i32) -> (i32, i32) {
    %c0_i32 = arith.constant 0 : i32
    %c0_i32_0 = arith.constant 0 : i32
    %c0_i32_1 = arith.constant 0 : i32
    return %c0_i32, %c0_i32_0 : i32, i32
  }
  func.func @transform_3(%arg0: i32) -> (i32, i32) {
    %c0_i32 = arith.constant 0 : i32
    %c0_i32_0 = arith.constant 0 : i32
    %c0_i32_1 = arith.constant 0 : i32
    return %c0_i32, %c0_i32_0 : i32, i32
  }
  func.func @transform_4(%arg0: i32) -> (i32, i32, i32) {
    %c0_i32 = arith.constant 0 : i32
    %c0_i32_0 = arith.constant 0 : i32
    %c0_i32_1 = arith.constant 0 : i32
    return %arg0, %c0_i32, %c0_i32_0 : i32, i32, i32
  }
}

</mosaic_0001>

<bundles_post_ra>
// kernel: tpu_custom_call.1
= control target key start
LH: loop header
LB: loop body
LE: loop exit
PB: predicated region body
PF: predicated region fallthrough
CT: control target
= control target key end

     0   :  { %9 = vsyncpa [#allocation3], 0  ;;  %s886_s0 = inlined_call_operand.hbm [shape: f32[2,4,256], index: 0, kind: input, shape index: {}]   ;;  %s887_s1 = inlined_call_operand.vmem [shape: f32[4,1], index: 1, kind: input, shape index: {}]   ;;  %s888_s2 = inlined_call_operand.vmem [shape: f32[4,4], index: 2, kind: input, shape index: {}]   ;;  %s889_s3 = inlined_call_operand.vmem [shape: f32[4,4], index: 3, kind: input, shape index: {}]   ;;  %s890_s4 = inlined_call_operand.hbm [shape: f32[2,4,256], index: 4, kind: output, shape index: {}]  }
   0x1   :  { %11 = vsyncpa [#allocation3 + $0x1], 0 }
   0x2   :  { %12 = vsyncpa [#allocation4], 0 }
   0x3   :  { %14 = vsyncpa [#allocation4 + $0x1], 0  ;;  %s708_s15 = smov 0   ;;  %s710_s16 = smov 0  }
   0x4   :  { %s712_s17 = smov 0   ;;  %s714_s18 = smov 0  }
   0x5 LB: > { %s729_s19 = sadd.s32 4294967295, %s675_s18   ;;  %s488_s20 = sadd.s32 4294967294, %s675_s18   ;;  %s675_s18 = sphi %s714_s18, %s905_s18   ;;  %s671_s17 = sphi %s712_s17, %s904_s17   ;;  %s667_s16 = sphi %s710_s16, %s903_s16   ;;  %s663_s15 = sphi %s708_s15, %s902_s15  }
   0x6   : > { %s733_s21 = sadd.s32 1, %s675_s18   ;;  %s27_s22 = sadd.s32 1, %s671_s17 }
   0x7   : > { %s24_s23 = ssub.s32 %s675_s18, %s733_s21  ;;  %p34_p0 = scmp.ne.s32.totalorder %s671_s17, %s667_s16 }
   0x8   : > { %p25_p1 = scmp.eq.s32.totalorder %s24_s23, 0  ;;  %p35_p2 = scmp.eq.s32.totalorder %s675_s18, 0 }
   0x9   : > { %p40_p3 = scmp.ne.s32.totalorder %s667_s16, %s663_s15  ;;  %p41_p4 = scmp.eq.s32.totalorder %s729_s19, 0 }
   0xa   : > { %s745_s24 = scalar_select %p25_p1, %s671_s17, %s27_s22  }
   0xb   : > { %p747_p5 = por %p35_p2, %p34_p0  ;;  %p751_p6 = por %p41_p4, %p40_p3 }
   0xc   : > { %p127_p7 = scmp.eq.s32.totalorder %s729_s19, 1  ;;  %p133_p8 = scmp.eq.s32.totalorder %s488_s20, 1 }
   0xd   : > { %p535_p10 = scmp.lt.s32.totalorder %s675_s18, 2  ;;  %s162_s29 = sand.u32 1, %s671_s17  }
   0xe   : > { %p758_p11 = por %p127_p7, %p34_p0  ;;  %p762_p12 = por %p133_p8, %p40_p3 }
   0xf   : > { %s507_s30 = sshll.u32 %s675_s18, 7  ;;  %s491_s5 = sshll.u32 %s162_s29, 3 }
  0x10   : > { %s894_s27 = scalar_select %p758_p11, 1, 0 }
  0x11   : > { %s895_s28 = scalar_select %p762_p12, 1, 0 }
  0x12   : > { %s771_s8 = scalar_lea.hbm %s886_s0, %s507_s30  ;;  %s166_s9 = scalar_lea.vmem [#allocation2], %s491_s5 }
  0x13   : > { %s174_s10 = sshll.u32 %s166_s9, 4  ;;  %p775_p13 = pnand %p535_p10, %p747_p5  ;;  %s779_s10 = int_to_ptr.vmem [resolvable:$true] %s174_s10 }
  0x14   : > { %s163_s12 = scalar_lea.sflag [#allocation3], %s162_s29  ;;  %s579_s13 = scalar_lea.hbm %s771_s8, 128 }
  0x15   : > { %p580_p2 = scmp.ne.s32.totalorder %s771_s8, %s579_s13  ;;  %p581_p3 = pneg %p775_p13 }
  0x16   : > { %s584_s22 = scalar_lea.hbm %s886_s0, 256  ;;  %p585_p5 = scmp.lt.u32.totalorder %s771_s8, %s886_s0 }
  0x17   : > { %p582_p4 = pnand %p581_p3, %p580_p2  ;;  %p586_p8 = scmp.lt.u32.totalorder %s584_s22, %s579_s13 }
  0x18   : > { %p588_p9 = scmp.lt.u32.totalorder %s579_s13, %s771_s8 }
  0x19   : > { %p583_p7 = pneg %p582_p4  ;;  %p587_p10 = por %p586_p8, %p585_p5 }
  0x1b   : > { %p589_p0 = por %p588_p9, %p587_p10 }
  0x1d   : > { %p590_p1 = pnand %p589_p0, %p583_p7 }
  0x1f   : > { %593 = shalt.err (!%p590_p1)
}
  0x20   : > { %s594_s29 = scalar_lea.vmem %s779_s10, 128  ;;  %s677_s30 = smov [#allocation2]  }
  0x21   : > { %p595_p2 = scmp.ne.s32.totalorder %s779_s10, %s594_s29  ;;  %s599_s5 = sshll.u32 %s677_s30, 4  ;;  %s600_s5 = int_to_ptr.vmem [resolvable:$false] %s599_s5 }
  0x22   : > { %s601_s6 = scalar_lea.vmem %s600_s5, 256  ;;  %p602_p11 = scmp.lt.s32.totalorder %s779_s10, %s600_s5 }
  0x23   : > { %p597_p4 = pnand %p595_p2, %p581_p3  ;;  %p603_p5 = scmp.lt.s32.totalorder %s601_s6, %s594_s29 }
  0x25   : > { %p598_p12 = pneg %p597_p4  ;;  %p604_p8 = por %p603_p5, %p602_p11 }
  0x27   : > { %p605_p9 = pnand %p604_p8, %p598_p12 }
  0x29   : > { %608 = shalt.err (!%p605_p9)
}
  0x2a   : > { %530 = dma.hbm_to_vmem [thread:$0]  (!%p775_p13), %s771_s8, 128, %s779_s10, %s163_s12  }
  0x2b   : > { %p897_p0 = scmp.lt.s32.totalorder %s675_s18, 3  ;;  %p898_p1 = scmp.ge.s32.totalorder %s675_s18, 1 }
  0x2d   : > { %p180_p3 = pnand %p898_p1, %p897_p0 }
  0x2e   : > { %s813_s7 = sand.u32 (!%p180_p3), 1, %s667_s16  }
  0x2f   : > { %183 = sbr.rel (%p180_p3) target bundleno = 807 (0x327), region = 36  ;;  %s495_s9 = sshll.u32 (!%p180_p3), %s813_s7, 3 }
  0x30   : > { %s186_s13 = scalar_lea.sflag (!%p180_p3), [#allocation3], %s813_s7  ;;  %s189_s11 = scalar_lea.vmem (!%p180_p3), [#allocation2], %s495_s9 }
  0x36   : > { %654 = dma.done.wait (%p751_p6), %s186_s13, 128  }
  0x37   : > { %656 = vsyncadd (%p751_p6), %s186_s13, 4294967168  ;;  %vm218_vm0 = vcmask 1043456   ;;  %v214_v0 = vld [vmem:[%s189_s11] sm:$0xff]  ;;  %v678_v5 = vmov 0.0   ;;  %vm679_vm1 = vmmov 0   ;;  %vm228_vm2 = vcmask 31744  }
  0x38   : > { %v216_v1 = vcombine.high %v214_v0, %v214_v0  ;;  %v219_v2 = vsel %vm218_vm0, %v214_v0, 0.0  ;;  %513 = vmatprep.subr.mxu0 %v678_v5  ;;  %518 = vmatprep.subr.mxu1 %v678_v5  ;;  %v225_v6 = vld [vmem:[%s887_s1] sm:$0xf]  ;;  %v680_v15 = vmov 0   ;;  %v681_v22 = vmov 839922192  }
  0x39   : > { %515 = vmatprep.mubr.msk.f32.mxu0 %vm679_vm1, %v678_v5  ;;  %520 = vmatprep.mubr.msk.f32.mxu1 %vm679_vm1, %v678_v5  ;;  %v227_v10 = vld [vmem:[%s888_s2] sm:$0xf]  ;;  %v394_v23 = vunpack.c.l.s4 %v681_v22  ;;  %v396_v24 = vlaneseq  ;;  %s508_s22 = sshll.u32 %s729_s19, 7  ;;  %s213_s23 = scalar_lea.vmem [#allocation5], %s495_s9 }
  0x3a   : > { %v220_v3 = vsel %vm218_vm0, %v216_v1, 0.0  ;;  %v306_v14 = vld [vmem:[%s889_s3] sm:$0xf]  ;;  %573 = vset.pattern.permute.xlu0 %v680_v15  ;;  %s418_s25 = sshll.u32 %s213_s23, 4  ;;  %s842_s5 = scalar_lea.hbm %s890_s4, %s508_s22  ;;  %s844_s25 = int_to_ptr.vmem [resolvable:$true] %s418_s25 }
  0x3b   : > { %v221_v4 = vadd.f32 %v220_v3, %v219_v2  ;;  %v395_v25 = vunpack.c.0.s8 %v394_v23  ;;  %v397_v26 = vshrl.u32 %v396_v24, 7  ;;  %s404_s6 = scalar_lea.sflag [#allocation4], %s813_s7  ;;  %s609_s13 = scalar_lea.vmem %s844_s25, 128 }
  0x3c   : > { %p610_p6 = scmp.ne.s32.totalorder %s844_s25, %s609_s13  ;;  %p899_p11 = scmp.ne.s32.totalorder %s894_s27, 0 }
  0x3d   : > { %222 = vadd.xlane.f32.xlu0 %v221_v4  ;;  %v398_v27 = vsub.s32 %v395_v25, %v397_v26  ;;  %s682_s19 = smov [#allocation5]  }
  0x3e   : > { %p611_p12 = pnand %p610_p6, %p899_p11  ;;  %s613_s9 = sshll.u32 %s682_s19, 4  ;;  %s614_s9 = int_to_ptr.vmem [resolvable:$false] %s613_s9 }
  0x3f   : > { %s615_s11 = scalar_lea.vmem %s614_s9, 256  ;;  %p616_p7 = scmp.lt.s32.totalorder %s844_s25, %s614_s9 }
  0x40   : > { %p612_p13 = pneg %p611_p12  ;;  %p617_p10 = scmp.lt.s32.totalorder %s615_s11, %s609_s13 }
  0x42   : > { %p618_p2 = por %p617_p10, %p616_p7 }
  0x44   : > { %p619_p4 = pnand %p618_p2, %p612_p13 }
  0xca   : > { %v223_v7 = vpop.xlane.xlu0 %222 }
  0xcb   : > { %v224_v8 = vmul.f32 0.00390625, %v223_v7 }
  0xcd   : > { %v226_v9 = vadd.f32 %v225_v6, %v224_v8 }
  0xcf   : > { %514 = vmatpush3.msk.msra.mxu0 %vm218_vm0, %v226_v9 }
  0xd0   : > { %516 = vmatmul.mubr.msk.f32.vlgmr.msra.gmra.mrb[0].mxu0 %vm228_vm2, %v227_v10 }
 0x1a3   : > { %v301_v11 = vpop.f32.mrb[0].mxu0 }
 0x1a4   : > { %v305_v12 = vmax.f32 %v301_v11, 0.0  ;;  %v517_v13 = vpop.f32.mrb[1].mxu0 }
 0x1a6   : > { %519 = vmatpush3.msk.msra.mxu1 %vm218_vm0, %v305_v12 }
 0x1a7   : > { %521 = vmatmul.mubr.msk.f32.vlgmr.msra.gmra.mrb[0].mxu1 %vm228_vm2, %v306_v14 }
 0x27a   : > { %v379_v16 = vpop.f32.mrb[0].mxu1 }
 0x27b   : > { %v501_v17 = vmul.f32 -1.442695, %v379_v16  ;;  %v522_v18 = vpop.f32.mrb[1].mxu1 }
 0x27d   : > { %575 = vpow2.f32 %v501_v17 }
 0x287   : > { %v576_v19 = vpop.eup %575 }
 0x288   : > { %v386_v20 = vadd.f32 1.0, %v576_v19 }
 0x28a   : > { %577 = vrcp.f32 %v386_v20 }
 0x294   : > { %v578_v21 = vpop.eup %577 }
 0x295   : > { %391 = vperm.xlu0 %573, %v578_v21  }
 0x314   : > { %v392_v28 = vpop.permute.xlu0 %391 }
 0x315   : > { %v399_v29 = vrot.slane %v392_v28, %v398_v27 }
 0x317   : > { %v401_v30 = vmul.f32 %v399_v29, %v214_v0 }
 0x319   : > { %402 = vst [vmem:[%s213_s23] sm:$0xff] %v401_v30 }
 0x31a   : > { %622 = shalt.err (!%p619_p4)
}
 0x31b   : > { %s623_s7 = scalar_lea.hbm %s842_s5, 128  ;;  %s627_s26 = scalar_lea.hbm %s890_s4, 256 }
 0x31c   : > { %p624_p5 = scmp.ne.s32.totalorder %s842_s5, %s623_s7  ;;  %p628_p0 = scmp.lt.u32.totalorder %s842_s5, %s890_s4 }
 0x31d   : > { %p629_p1 = scmp.lt.u32.totalorder %s627_s26, %s623_s7  ;;  %p631_p6 = scmp.lt.u32.totalorder %s623_s7, %s842_s5 }
 0x31e   : > { %p625_p8 = pnand %p624_p5, %p899_p11 }
 0x31f   : > { %p630_p3 = por %p629_p1, %p628_p0 }
 0x320   : > { %p626_p9 = pneg %p625_p8 }
 0x321   : > { %p632_p12 = por %p631_p6, %p630_p3 }
 0x323   : > { %p633_p13 = pnand %p632_p12, %p626_p9 }
 0x325   : > { %636 = shalt.err (!%p633_p13)
}
 0x326   : > { %525 = dma.vmem_to_hbm [thread:$0]  (%p899_p11), %s844_s25, 128, %s842_s5, %s404_s6  }
 0x327 PF: > { %s430_s20 = sand.u32 1, %s663_s15   ;;  %p900_p7 = scmp.ne.s32.totalorder %s895_s28, 0 }
 0x328   : > { %p901_p10 = scmp.ge.s32.totalorder %s675_s18, 2  ;;  %s431_s22 = scalar_lea.sflag [#allocation4], %s430_s20 }
 0x32a   : > { %p532_p2 = pnand %p901_p10, %p900_p7 }
 0x32c   : > { %658 = dma.done.wait (!%p532_p2), %s431_s22, 128  }
 0x32d   : > { %660 = vsyncadd (!%p532_p2), %s431_s22, 4294967168  ;;  %p17_p4 = scmp.ge.s32.totalorder %s733_s21, 4   ;;  %s902_s15 = smov %s667_s16 }
 0x32e   : > { %s903_s16 = smov %s671_s17  ;;  %s904_s17 = smov %s745_s24 }
 0x32f   : > { %s905_s18 = smov %s733_s21  ;;  %19 = sbr.rel (!%p17_p4) target bundleno = 5 (0x5), region = 81 }
 0x336   :  { %436 = vsyncpa [#allocation3], 1 }
 0x337   :  { %438 = vsyncpa [#allocation3 + $0x1], 1 }
 0x338   :  { %439 = vsyncpa [#allocation4], 1 }
 0x339   :  { %441 = vsyncpa [#allocation4 + $0x1], 1 }

</bundles_post_ra>
